<compile_context>
chip_gen: v6e
topology: v6e:2x2x1
jax: 0.10.0
libtpu: 0.0.40
codegen_flags: <defaults>
</compile_context>

<pallas_src>
import jax
import jax.numpy as jnp
from jax import lax
from jax.experimental import pallas as pl
from jax.experimental.pallas import tpu as pltpu

BN_EPS = 1e-5
KMAX = 7          # largest kernel size (conv7)
PAD = 3           # halo for the largest kernel
MISH_CLAMP = 20.0


# ----------------------------------------------------------------------------------------------
# Kernels
# ----------------------------------------------------------------------------------------------
def _conv_tile(x_ref, wf_ref, bf_ref):
    """Fused 3-branch conv on one (Cin, TILE_L + 2*PAD) halo window -> (Cout, TILE_L) f32."""
    xw = x_ref[0, 0]                                              # (Cin, TILE_L + 2*PAD)
    tl = xw.shape[1] - 2 * PAD
    # im2col: 7 shifted views stacked on sublanes -> one depth KMAX*Cin MXU contraction.
    cols = jnp.concatenate([xw[:, k:k + tl] for k in range(KMAX)], axis=0)   # (KMAX*Cin, TILE_L)
    return jnp.dot(wf_ref[...], cols, preferred_element_type=jnp.float32) + bf_ref[...]


def _stats_kernel(x_ref, wf_ref, bf_ref, s1_ref, s2_ref):
    """Pass 1: stream x, accumulate S1 = sum_L conv and S2 = sum_L conv^2 per (batch, channel)."""
    l = pl.program_id(1)
    conv = _conv_tile(x_ref, wf_ref, bf_ref)                      # (Cout, TILE_L) f32
    ps1 = jnp.sum(conv, axis=1, keepdims=True)                    # (Cout, 1)
    ps2 = jnp.sum(conv * conv, axis=1, keepdims=True)             # (Cout, 1)

    @pl.when(l == 0)
    def _init():
        s1_ref[0] = ps1
        s2_ref[0] = ps2

    @pl.when(l != 0)
    def _acc():
        s1_ref[0] = s1_ref[0] + ps1
        s2_ref[0] = s2_ref[0] + ps2


def _apply_kernel(x_ref, wf_ref, bf_ref, a_ref, b_ref, o_ref):
    """Pass 2: recompute conv tile, apply folded (attention-scale x BN) FMA + Mish, store NCL."""
    conv = _conv_tile(x_ref, wf_ref, bf_ref)                      # (Cout, TILE_L) f32
    y = conv * a_ref[0] + b_ref[...]                              # single per-(c,b) FMA epilogue
    t = jnp.exp(jnp.minimum(y, MISH_CLAMP))                       # one EUP exp per element
    u = t * (t + 2.0)
    o_ref[0] = y * (u / (u + 2.0))                                # mish(y) = y*tanh(softplus(y))


def _make_fold_kernel(batch, length):
    """Tiny gridless kernel: attention MLP + softmax + BN batch stats -> per-(c,b) A, shift Bc."""
    inv_l = 1.0 / float(length)
    inv_bl = 1.0 / float(batch * length)

    def fold_kernel(s1_ref, s2_ref, aw1_ref, ab1_ref, aw2_ref, ab2_ref,
                    sel_ref, gamma_ref, beta_ref, a_ref, b_ref):
        # Channel-major (Cout, B) working set; everything here is O(B*Cout), one shot.
        s1 = jnp.concatenate([s1_ref[b] for b in range(batch)], axis=1)     # (Cout, B)
        s2 = jnp.concatenate([s2_ref[b] for b in range(batch)], axis=1)     # (Cout, B)
        pooled = s1 * inv_l                                                 # AdaptiveAvgPool1d(1)
        h = jnp.maximum(
            jnp.dot(aw1_ref[...], pooled, preferred_element_type=jnp.float32) + ab1_ref[...],
            0.0)                                                            # (Hid, B)
        logits = (jnp.dot(aw2_ref[...], h, preferred_element_type=jnp.float32)
                  + ab2_ref[...])                                           # (3, B)
        m = jnp.max(logits, axis=0, keepdims=True)
        e = jnp.exp(logits - m)
        attn = e / jnp.sum(e, axis=0, keepdims=True)                        # softmax over branches
        s = jnp.dot(sel_ref[...], attn, preferred_element_type=jnp.float32)  # (Cout, B) branch wt

        # BatchNorm1d training-mode stats of weighted = conv * s, derived analytically from S1/S2.
        mu = jnp.sum(s * s1, axis=1, keepdims=True) * inv_bl                # (Cout, 1)
        ex2 = jnp.sum(s * s * s2, axis=1, keepdims=True) * inv_bl           # (Cout, 1)
        var = ex2 - mu * mu
        rg = lax.rsqrt(var + BN_EPS) * gamma_ref[...]                       # (Cout, 1)
        b_ref[...] = beta_ref[...] - mu * rg                                # shift (channel only)
        for b in range(batch):                                              # scale (channel,batch)
            a_ref[b] = s[:, b:b + 1] * rg

    return fold_kernel


# ----------------------------------------------------------------------------------------------
# Wrapper
# ----------------------------------------------------------------------------------------------
def lightweight_multiscale_conv(x, params, *, tile_l=None, matmul_dtype=jnp.float32):
    """Forward pass of LightweightMultiScaleConv (BatchNorm in training mode)."""
    B, Cin, L = x.shape
    Cout = params["gamma"].shape[0]
    C3 = Cout // 3
    Hid = params["ab1"].shape[0]

    # ---- L tiling: lane tiles that are multiples of 128 when possible ----
    if tile_l is None:
        tile_l = next((t for t in (1024, 512, 256, 128) if L % t == 0), L)
    assert L % tile_l == 0, "L must be divisible by tile_l"
    nt = L // tile_l
    twin = tile_l + 2 * PAD

    # ---- fuse the 3 conv branches into one (Cout, KMAX*Cin) weight (centre-aligned taps) ----
    w3p = jnp.pad(params["w3"], ((0, 0), (0, 0), (2, 2)))
    w5p = jnp.pad(params["w5"], ((0, 0), (0, 0), (1, 1)))
    wall = jnp.concatenate([w3p, w5p, params["w7"]], axis=0)                # (Cout, Cin, KMAX)
    wf = jnp.transpose(wall, (0, 2, 1)).reshape(Cout, KMAX * Cin).astype(matmul_dtype)
    bf = jnp.concatenate([params["b3"], params["b5"], params["b7"]]).reshape(Cout, 1)
    sel = jnp.repeat(jnp.eye(3, dtype=jnp.float32), C3, axis=0)             # (Cout, 3) branch sel

    # ---- overlapping halo windows of x: (B, nt, Cin, TILE_L + 2*PAD) ----
    # TODO(synk): replace with element-offset / manual-DMA halo fetches to drop this copy of x.
    xp = jnp.pad(x, ((0, 0), (0, 0), (PAD, PAD)))
    win_idx = (jnp.arange(nt) * tile_l)[:, None] + jnp.arange(twin)[None, :]
    x_win = jnp.transpose(xp[:, :, win_idx], (0, 2, 1, 3)).astype(matmul_dtype)

    # ---- VMEM budget from live tile bytes, capped by the device's reported capacity ----
    op_bytes = jnp.dtype(matmul_dtype).itemsize
    tile_bytes = (3 * Cin * twin * op_bytes                 # x halo window (multi-buffered)
                  + KMAX * Cin * tile_l * op_bytes          # im2col slab
                  + 3 * Cout * tile_l * 4                   # conv / epilogue temporaries (f32)
                  + 2 * Cout * tile_l * 4                   # double-buffered output tile
                  + 4 * Cout * (KMAX * Cin + 8))            # fused weights, bias, A, Bc
    try:
        vmem_cap = int(pltpu.get_tpu_info().vmem_capacity_bytes)
    except Exception:                                       # conservative fallback: v7x per-core
        vmem_cap = 64 << 20
    vmem_limit = int(min(max(4 * tile_bytes, 8 << 20), (vmem_cap * 3) // 4))

    # ---- BlockSpecs ----
    def x_index(b, l):
        return (b, l, 0, 0)

    x_spec = pl.BlockSpec((1, 1, Cin, twin), x_index)
    x_spec_p1 = x_spec
    if nt >= 3:
        try:  # deeper input pipelining for the pure-streaming stats pass (hides DMA latency)
            x_spec_p1 = pl.BlockSpec((1, 1, Cin, twin), x_index, pipeline_mode=pl.Buffered(3))
        except (TypeError, AttributeError):
            x_spec_p1 = x_spec
    wf_spec = pl.BlockSpec((Cout, KMAX * Cin), lambda b, l: (0, 0))
    bf_spec = pl.BlockSpec((Cout, 1), lambda b, l: (0, 0))
    stat_spec = pl.BlockSpec((1, Cout, 1), lambda b, l: (b, 0, 0))

    # ---- pass 1: stream x, accumulate S1/S2 per (batch, channel) across L tiles ----
    stats_shape = jax.ShapeDtypeStruct((B, Cout, 1), jnp.float32)
    s1, s2 = pl.pallas_call(
        _stats_kernel,
        out_shape=(stats_shape, stats_shape),
        grid_spec=pltpu.PrefetchScalarGridSpec(
            num_scalar_prefetch=0,
            grid=(B, nt),
            in_specs=[x_spec_p1, wf_spec, bf_spec],
            out_specs=(stat_spec, stat_spec)),
        compiler_params=pltpu.CompilerParams(
            dimension_semantics=("parallel", "arbitrary"),
            vmem_limit_bytes=vmem_limit),
    )(x_win, wf, bf)

    # ---- fold: attention MLP + softmax + BN stats -> per-(channel,batch) scale A, shift Bc ----
    vmem = pl.BlockSpec(memory_space=pltpu.MemorySpace.VMEM)
    a_cb, b_c = pl.pallas_call(
        _make_fold_kernel(B, L),
        out_shape=(jax.ShapeDtypeStruct((B, Cout, 1), jnp.float32),
                   jax.ShapeDtypeStruct((Cout, 1), jnp.float32)),
        in_specs=[vmem] * 9,
        out_specs=(vmem, vmem),
    )(s1, s2,
      params["aw1"].T, params["ab1"].reshape(Hid, 1),
      params["aw2"].T, params["ab2"].reshape(3, 1),
      sel, params["gamma"].reshape(Cout, 1), params["beta"].reshape(Cout, 1))

    # ---- pass 2: recompute conv, out = mish(conv*A + Bc), stored directly as (B, Cout, L) ----
    a_spec = pl.BlockSpec((1, Cout, 1), lambda b, l: (b, 0, 0))
    bvec_spec = pl.BlockSpec((Cout, 1), lambda b, l: (0, 0))
    out_spec = pl.BlockSpec((1, Cout, tile_l), lambda b, l: (b, 0, l))
    out = pl.pallas_call(
        _apply_kernel,
        out_shape=jax.ShapeDtypeStruct((B, Cout, L), jnp.float32),
        grid_spec=pltpu.PrefetchScalarGridSpec(
            num_scalar_prefetch=0,
            grid=(B, nt),
            in_specs=[x_spec, wf_spec, bf_spec, a_spec, bvec_spec],
            out_specs=out_spec),
        compiler_params=pltpu.CompilerParams(
            dimension_semantics=("parallel", "parallel"),
            vmem_limit_bytes=vmem_limit),
    )(x_win, wf, bf, a_cb, b_c)
    return out


# ----------------------------------------------------------------------------------------------
# Pure-JAX reference (mirrors the PyTorch forward, BN in training mode)
# ----------------------------------------------------------------------------------------------
def reference(x, p):
    def conv(xx, w, b, pad):
        y = lax.conv_general_dilated(
            xx, w, window_strides=(1,), padding=[(pad, pad)],
            dimension_numbers=("NCH", "OIH", "NCH"))
        return y + b[None, :, None]

    out = jnp.concatenate([conv(x, p["w3"], p["b3"], 1),
                           conv(x, p["w5"], p["b5"], 2),
                           conv(x, p["w7"], p["b7"], 3)], axis=1)
    pooled = out.mean(axis=2)
    h = jax.nn.relu(pooled @ p["aw1"] + p["ab1"])
    attn = jax.nn.softmax(h @ p["aw2"] + p["ab2"], axis=1)
    C3 = out.shape[1] // 3
    weighted = jnp.concatenate([
        out[:, :C3] * attn[:, 0][:, None, None],
        out[:, C3:2 * C3] * attn[:, 1][:, None, None],
        out[:, 2 * C3:] * attn[:, 2][:, None, None]], axis=1)
    mu = weighted.mean(axis=(0, 2), keepdims=True)
    var = ((weighted - mu) ** 2).mean(axis=(0, 2), keepdims=True)
    y = (weighted - mu) / jnp.sqrt(var + BN_EPS)
    y = y * p["gamma"][None, :, None] + p["beta"][None, :, None]
    sp = jnp.where(y > MISH_CLAMP, y, jnp.log1p(jnp.exp(jnp.minimum(y, MISH_CLAMP))))
    return y * jnp.tanh(sp)


if __name__ == "__main__":
    # Small shapes consistent with the module (out_channels % 3 == 0).  L is a multiple of 128 so
    # the grid/tiling path and lane-dense stores are actually exercised (tile_l=128 -> grid (2,2)).
    B, Cin, L, Cout = 2, 4, 256, 24
    C3, Hid = Cout // 3, Cout // 4

    key = jax.random.PRNGKey(0)
    ks = jax.random.split(key, 11)

    def init(k, shape, scale=0.1):
        return scale * jax.random.normal(k, shape, jnp.float32)

    params = {
        "w3": init(ks[0], (C3, Cin, 3)),   # PyTorch Conv1d weight layout (O, I, K)
        "b3": init(ks[1], (C3,)),
        "w5": init(ks[2], (C3, Cin, 5)),
        "b5": init(ks[3], (C3,)),
        "w7": init(ks[4], (C3, Cin, 7)),
        "b7": init(ks[5], (C3,)),
        "aw1": init(ks[6], (Cout, Hid)),   # = torch Linear(out, out//4).weight.T
        "ab1": init(ks[7], (Hid,)),
        "aw2": init(ks[8], (Hid, 3)),      # = torch Linear(out//4, 3).weight.T
        "ab2": init(ks[9], (3,)),
        "gamma": jnp.ones((Cout,), jnp.float32),   # BatchNorm1d default init
        "beta": jnp.zeros((Cout,), jnp.float32),
    }
    x = jax.random.normal(ks[10], (B, Cin, L), jnp.float32)

    # f32 path, explicit tile_l=128 to exercise cross-tile S1/S2 accumulation (grid (2, 2)).
    out = lightweight_multiscale_conv(x, params, tile_l=128)
    jax.block_until_ready(out)
    ref = reference(x, params)
    assert out.shape == (B, Cout, L)
    assert jnp.allclose(out, ref, atol=1e-3, rtol=1e-3), "f32 kernel mismatch vs reference"

    # bf16 matmul-operand path (HBM-traffic optimization for v6e/v7x); stats/epilogue stay f32.
    out_bf16 = lightweight_multiscale_conv(x, params, matmul_dtype=jnp.bfloat16)
    jax.block_until_ready(out_bf16)
    assert out_bf16.shape == (B, Cout, L)
    assert bool(jnp.all(jnp.isfinite(out_bf16)))
    assert jnp.allclose(out_bf16, ref, atol=6e-2, rtol=6e-2), "bf16 kernel mismatch vs reference"

    print("KERNEL_OK")
</pallas_src>

<mosaic_0001>
module attributes {stable_mosaic.version = 11 : i64} {
  func.func @_stats_kernel(%arg0: i32, %arg1: i32, %arg2: memref<1x1x4x134xf32, #tpu.memory_space<vmem>>, %arg3: memref<24x28xf32, #tpu.memory_space<vmem>>, %arg4: memref<24x1xf32, #tpu.memory_space<vmem>>, %arg5: memref<1x24x1xf32, #tpu.memory_space<vmem>>, %arg6: memref<1x24x1xf32, #tpu.memory_space<vmem>>) attributes {dimension_semantics = [#tpu.dimension_semantics<parallel>, #tpu.dimension_semantics<arbitrary>], iteration_bounds = array<i64: 2, 2>, scalar_prefetch = 0 : i64, scratch_operands = 0 : i64, tpu.core_type = #tpu.core_type<tc>, window_params = [{transform_indices = @transform_0, window_bounds = array<i64: 1, 1, 4, 134>}, {pipeline_mode = #tpu.pipeline_mode<synchronous>, transform_indices = @transform_1, window_bounds = array<i64: 24, 28>}, {pipeline_mode = #tpu.pipeline_mode<synchronous>, transform_indices = @transform_2, window_bounds = array<i64: 24, 1>}, {transform_indices = @transform_3, window_bounds = array<i64: 1, 24, 1>}, {transform_indices = @transform_4, window_bounds = array<i64: 1, 24, 1>}]} {
    %c0 = arith.constant 0 : index
    %c0_0 = arith.constant 0 : index
    %c0_1 = arith.constant 0 : index
    %c0_2 = arith.constant 0 : index
    %0 = vector.load %arg2[%c0, %c0_0, %c0_1, %c0_2] : memref<1x1x4x134xf32, #tpu.memory_space<vmem>>, vector<1x1x4x134xf32>
    %1 = vector.shape_cast %0 : vector<1x1x4x134xf32> to vector<4x134xf32>
    %2 = vector.extract_strided_slice %1 {offsets = [0, 0], sizes = [4, 128], strides = [1, 1]} : vector<4x134xf32> to vector<4x128xf32>
    %3 = vector.extract_strided_slice %1 {offsets = [0, 1], sizes = [4, 128], strides = [1, 1]} : vector<4x134xf32> to vector<4x128xf32>
    %4 = vector.extract_strided_slice %1 {offsets = [0, 2], sizes = [4, 128], strides = [1, 1]} : vector<4x134xf32> to vector<4x128xf32>
    %5 = vector.extract_strided_slice %1 {offsets = [0, 3], sizes = [4, 128], strides = [1, 1]} : vector<4x134xf32> to vector<4x128xf32>
    %6 = vector.extract_strided_slice %1 {offsets = [0, 4], sizes = [4, 128], strides = [1, 1]} : vector<4x134xf32> to vector<4x128xf32>
    %7 = vector.extract_strided_slice %1 {offsets = [0, 5], sizes = [4, 128], strides = [1, 1]} : vector<4x134xf32> to vector<4x128xf32>
    %8 = vector.extract_strided_slice %1 {offsets = [0, 6], sizes = [4, 128], strides = [1, 1]} : vector<4x134xf32> to vector<4x128xf32>
    %9 = tpu.concatenate %2, %3, %4, %5, %6, %7, %8 in 0 : vector<4x128xf32>, vector<4x128xf32>, vector<4x128xf32>, vector<4x128xf32>, vector<4x128xf32>, vector<4x128xf32>, vector<4x128xf32> -> vector<28x128xf32>
    %c0_3 = arith.constant 0 : index
    %c0_4 = arith.constant 0 : index
    %10 = vector.load %arg3[%c0_3, %c0_4] : memref<24x28xf32, #tpu.memory_space<vmem>>, vector<24x28xf32>
    %cst = arith.constant dense<0.000000e+00> : vector<24x128xf32>
    %11 = tpu.matmul %10, %9, %cst {dimension_numbers = #tpu.dot_dimension_numbers<[1], [0], [0], [1], [0, 0, 1, 1], [], []>} : vector<24x28xf32>, vector<28x128xf32>, vector<24x128xf32> -> vector<24x128xf32>
    %c0_5 = arith.constant 0 : index
    %c0_6 = arith.constant 0 : index
    %12 = vector.load %arg4[%c0_5, %c0_6] : memref<24x1xf32, #tpu.memory_space<vmem>>, vector<24x1xf32>
    %13 = vector.broadcast %12 : vector<24x1xf32> to vector<24x128xf32>
    %14 = arith.addf %11, %13 : vector<24x128xf32>
    %cst_7 = arith.constant dense<0.000000e+00> : vector<24xf32>
    %15 = vector.multi_reduction <add>, %14, %cst_7 [1] : vector<24x128xf32> to vector<24xf32>
    %16 = vector.shape_cast %15 : vector<24xf32> to vector<24x1xf32>
    %17 = arith.mulf %14, %14 : vector<24x128xf32>
    %cst_8 = arith.constant dense<0.000000e+00> : vector<24xf32>
    %18 = vector.multi_reduction <add>, %17, %cst_8 [1] : vector<24x128xf32> to vector<24xf32>
    %19 = vector.shape_cast %18 : vector<24xf32> to vector<24x1xf32>
    %c0_i32 = arith.constant 0 : i32
    %20 = arith.cmpi eq, %arg1, %c0_i32 : i32
    %21 = arith.extui %20 : i1 to i32
    %c0_i32_9 = arith.constant 0 : i32
    %22 = arith.cmpi ne, %21, %c0_i32_9 : i32
    scf.if %22 {
      %c0_12 = arith.constant 0 : index
      %c0_13 = arith.constant 0 : index
      %c0_14 = arith.constant 0 : index
      %26 = vector.load %arg5[%c0_12, %c0_13, %c0_14] : memref<1x24x1xf32, #tpu.memory_space<vmem>>, vector<1x24x1xf32>
      %27 = vector.shape_cast %26 : vector<1x24x1xf32> to vector<24x1xf32>
      %28 = vector.shape_cast %16 : vector<24x1xf32> to vector<1x24x1xf32>
      tpu.vector_store %arg5[%c0_12, %c0_13, %c0_14], %28 {strides = array<i32>} : memref<1x24x1xf32, #tpu.memory_space<vmem>>, vector<1x24x1xf32>,
      %c0_15 = arith.constant 0 : index
      %c0_16 = arith.constant 0 : index
      %c0_17 = arith.constant 0 : index
      %29 = vector.load %arg6[%c0_15, %c0_16, %c0_17] : memref<1x24x1xf32, #tpu.memory_space<vmem>>, vector<1x24x1xf32>
      %30 = vector.shape_cast %29 : vector<1x24x1xf32> to vector<24x1xf32>
      %31 = vector.shape_cast %19 : vector<24x1xf32> to vector<1x24x1xf32>
      tpu.vector_store %arg6[%c0_15, %c0_16, %c0_17], %31 {strides = array<i32>} : memref<1x24x1xf32, #tpu.memory_space<vmem>>, vector<1x24x1xf32>,
    } else {
    }
    %c0_i32_10 = arith.constant 0 : i32
    %23 = arith.cmpi ne, %arg1, %c0_i32_10 : i32
    %24 = arith.extui %23 : i1 to i32
    %c0_i32_11 = arith.constant 0 : i32
    %25 = arith.cmpi ne, %24, %c0_i32_11 : i32
    scf.if %25 {
      %c0_12 = arith.constant 0 : index
      %c0_13 = arith.constant 0 : index
      %c0_14 = arith.constant 0 : index
      %26 = vector.load %arg5[%c0_12, %c0_13, %c0_14] : memref<1x24x1xf32, #tpu.memory_space<vmem>>, vector<1x24x1xf32>
      %27 = vector.shape_cast %26 : vector<1x24x1xf32> to vector<24x1xf32>
      %28 = arith.addf %27, %16 : vector<24x1xf32>
      %c0_15 = arith.constant 0 : index
      %c0_16 = arith.constant 0 : index
      %c0_17 = arith.constant 0 : index
      %29 = vector.load %arg5[%c0_15, %c0_16, %c0_17] : memref<1x24x1xf32, #tpu.memory_space<vmem>>, vector<1x24x1xf32>
      %30 = vector.shape_cast %29 : vector<1x24x1xf32> to vector<24x1xf32>
      %31 = vector.shape_cast %28 : vector<24x1xf32> to vector<1x24x1xf32>
      tpu.vector_store %arg5[%c0_15, %c0_16, %c0_17], %31 {strides = array<i32>} : memref<1x24x1xf32, #tpu.memory_space<vmem>>, vector<1x24x1xf32>,
      %c0_18 = arith.constant 0 : index
      %c0_19 = arith.constant 0 : index
      %c0_20 = arith.constant 0 : index
      %32 = vector.load %arg6[%c0_18, %c0_19, %c0_20] : memref<1x24x1xf32, #tpu.memory_space<vmem>>, vector<1x24x1xf32>
      %33 = vector.shape_cast %32 : vector<1x24x1xf32> to vector<24x1xf32>
      %34 = arith.addf %33, %19 : vector<24x1xf32>
      %c0_21 = arith.constant 0 : index
      %c0_22 = arith.constant 0 : index
      %c0_23 = arith.constant 0 : index
      %35 = vector.load %arg6[%c0_21, %c0_22, %c0_23] : memref<1x24x1xf32, #tpu.memory_space<vmem>>, vector<1x24x1xf32>
      %36 = vector.shape_cast %35 : vector<1x24x1xf32> to vector<24x1xf32>
      %37 = vector.shape_cast %34 : vector<24x1xf32> to vector<1x24x1xf32>
      tpu.vector_store %arg6[%c0_21, %c0_22, %c0_23], %37 {strides = array<i32>} : memref<1x24x1xf32, #tpu.memory_space<vmem>>, vector<1x24x1xf32>,
    } else {
    }
    return
  }
  func.func @transform_0(%arg0: i32, %arg1: i32) -> (i32, i32, i32, i32) {
    %c0_i32 = arith.constant 0 : i32
    %c0_i32_0 = arith.constant 0 : i32
    %c0_i32_1 = arith.constant 0 : i32
    return %arg0, %arg1, %c0_i32, %c0_i32_0 : i32, i32, i32, i32
  }
  func.func @transform_1(%arg0: i32, %arg1: i32) -> (i32, i32) {
    %c0_i32 = arith.constant 0 : i32
    %c0_i32_0 = arith.constant 0 : i32
    %c0_i32_1 = arith.constant 0 : i32
    return %c0_i32, %c0_i32_0 : i32, i32
  }
  func.func @transform_2(%arg0: i32, %arg1: i32) -> (i32, i32) {
    %c0_i32 = arith.constant 0 : i32
    %c0_i32_0 = arith.constant 0 : i32
    %c0_i32_1 = arith.constant 0 : i32
    return %c0_i32, %c0_i32_0 : i32, i32
  }
  func.func @transform_3(%arg0: i32, %arg1: i32) -> (i32, i32, i32) {
    %c0_i32 = arith.constant 0 : i32
    %c0_i32_0 = arith.constant 0 : i32
    %c0_i32_1 = arith.constant 0 : i32
    return %arg0, %c0_i32, %c0_i32_0 : i32, i32, i32
  }
  func.func @transform_4(%arg0: i32, %arg1: i32) -> (i32, i32, i32) {
    %c0_i32 = arith.constant 0 : i32
    %c0_i32_0 = arith.constant 0 : i32
    %c0_i32_1 = arith.constant 0 : i32
    return %arg0, %c0_i32, %c0_i32_0 : i32, i32, i32
  }
}

</mosaic_0001>

<bundles_post_ra>
// kernel: tpu_custom_call.1
= control target key start
LH: loop header
LB: loop body
LE: loop exit
PB: predicated region body
PF: predicated region fallthrough
CT: control target
= control target key end

     0   :  { %10 = vsyncpa [#allocation3], 0  ;;  %s1046_s0 = inlined_call_operand.hbm [shape: f32[2,2,4,134], index: 0, kind: input, shape index: {}]   ;;  %s1047_s1 = inlined_call_operand.vmem [shape: f32[24,28], index: 1, kind: input, shape index: {}]   ;;  %s1048_s2 = inlined_call_operand.vmem [shape: f32[24,1], index: 2, kind: input, shape index: {}]   ;;  %s1049_s3 = inlined_call_operand.vmem [shape: f32[2,24,1], index: 3, kind: output, shape index: {0}]   ;;  %s1050_s4 = inlined_call_operand.vmem [shape: f32[2,24,1], index: 4, kind: output, shape index: {1}]  }
   0x1   :  { %12 = vsyncpa [#allocation3 + $0x1], 0  ;;  %s838_s15 = smov 0   ;;  %s840_s16 = smov 0  }
   0x2   :  { %s842_s17 = smov 0   ;;  %s844_s18 = smov 0  }
   0x3   :  { %s846_s19 = smov 0   ;;  %s848_s20 = smov 0  }
   0x4   :  { %s850_s21 = smov 0   ;;  %s852_s22 = smov 0  }
   0x5 LB: > { %s570_s23 = sadd.s32 4294967295, %s801_s22   ;;  %s27_s24 = sadd.s32 1, %s793_s20  ;;  %s801_s22 = sphi %s852_s22, %s18_s22   ;;  %s797_s21 = sphi %s850_s21, %s1063_s21   ;;  %s793_s20 = sphi %s848_s20, %s1062_s20   ;;  %s789_s19 = sphi %s846_s19, %s1061_s19   ;;  %s785_s18 = sphi %s844_s18, %s1060_s18   ;;  %s781_s17 = sphi %s842_s17, %s1059_s17   ;;  %s777_s16 = sphi %s840_s16, %s1058_s16   ;;  %s773_s15 = sphi %s838_s15, %s1057_s15  }
   0x6   : > { %p28_p0 = scmp.ge.s32.totalorder %s27_s24, 2  ;;  %s30_s25 = sadd.s32 1, %s797_s21 }
   0x7   : > { %s39_s26 = sadd.s32 1, %s781_s17  ;;  %p46_p1 = scmp.ne.s32.totalorder %s781_s17, %s777_s16 }
   0x8   : > { %s1065_s24 = smov (%p28_p0, %s27_s24), 0  ;;  %s1067_s25 = smov (!%p28_p0, %s30_s25), %s797_s21 }
   0x9   : > { %s35_s27 = ssub.s32 %s793_s20, %s1065_s24  ;;  %p47_p2 = scmp.eq.s32.totalorder %s801_s22, 0 }
   0xa   : > { %p32_p3 = scmp.ge.s32.totalorder %s1067_s25, 2  ;;  %p52_p4 = scmp.ne.s32.totalorder %s777_s16, %s773_s15 }
   0xb   : > { %p889_p5 = por %p47_p2, %p46_p1  ;;  %p53_p6 = scmp.eq.s32.totalorder %s570_s23, 0 }
   0xc   : > { %s1069_s25 = smov (%p32_p3, %s1067_s25), 0  ;;  %p629_p8 = scmp.lt.s32.totalorder %s801_s22, 4 }
   0xd   : > { %1053 = sst [smem:[#allocation5_spill]] %s1069_s25  ;;  %p895_p7 = por %p53_p6, %p52_p4 }
   0xe   : > { %s34_s30 = ssub.s32 %s797_s21, %s1069_s25  ;;  %s176_s6 = sand.u32 1, %s781_s17  }
   0xf   : > { %s36_s5 = sor.u32 %s35_s27, %s34_s30  ;;  %s574_s7 = sshll.u32 %s176_s6, 3 }
  0x10   : > { %p37_p9 = scmp.eq.s32.totalorder %s36_s5, 0  ;;  %s575_s8 = sshll.u32 %s793_s20, 1 }
  0x11   : > { %s576_s10 = sshll.u32 %s797_s21, 2  ;;  %s180_s12 = scalar_lea.vmem [#allocation2], %s574_s7 }
  0x12   : > { %s905_s9 = scalar_select %p37_p9, %s781_s17, %s39_s26  }
  0x13   : > { %s186_s11 = sadd.s32 %s576_s10, %s575_s8  ;;  %s190_s13 = sshll.u32 %s180_s12, 4  ;;  %s191_s13 = int_to_ptr.vmem [resolvable:$true] %s190_s13 }
  0x14   : > { %s577_s14 = sshll.u32 %s186_s11, 6  ;;  %p915_p10 = pnand %p629_p8, %p889_p5 }
  0x15   : > { %s188_s25 = scalar_lea.hbm %s1046_s0, %s577_s14  ;;  %p578_p11 = scmp.ge.s32.totalorder %s801_s22, 1 }
  0x16   : > { %p195_p12 = scmp.lt.s32.totalorder %s801_s22, 5  ;;  %s177_s26 = scalar_lea.sflag [#allocation3], %s176_s6 }
  0x17   : > { %p709_p13 = pneg %p915_p10  ;;  %s720_s30 = scalar_lea.vmem %s191_s13, 128 }
  0x18   : > { %p721_p0 = scmp.ne.s32.totalorder %s191_s13, %s720_s30  ;;  %s803_s5 = smov [#allocation2]  }
  0x19   : > { %s725_s7 = sshll.u32 %s803_s5, 4  ;;  %s726_s7 = int_to_ptr.vmem [resolvable:$false] %s725_s7 }
  0x1a   : > { %p723_p1 = pnand %p721_p0, %p709_p13  ;;  %s727_s8 = scalar_lea.vmem %s726_s7, 256 }
  0x1b   : > { %p728_p3 = scmp.lt.s32.totalorder %s191_s13, %s726_s7  ;;  %p729_p4 = scmp.lt.s32.totalorder %s727_s8, %s720_s30 }
  0x1c   : > { %p724_p2 = pneg %p723_p1 }
  0x1d   : > { %p730_p5 = por %p729_p4, %p728_p3 }
  0x1f   : > { %p731_p6 = pnand %p730_p5, %p724_p2 }
  0x21   : > { %734 = shalt.err (!%p731_p6)
}
  0x22   : > { %628 = dma.hbm_to_vmem [thread:$0]  (!%p915_p10), %s188_s25, 128, %s191_s13, %s177_s26  }
  0x23   : > { %p196_p8 = pnand %p578_p11, %p195_p12 }
  0x24   : > { %s201_s28 = sand.u32 (!%p196_p8), 1, %s777_s16  }
  0x25   : > { %199 = sbr.rel (%p196_p8) target bundleno = 545 (0x221), region = 32  ;;  %s579_s6 = sshll.u32 (!%p196_p8), %s201_s28, 3 }
  0x26   : > { %s202_s10 = scalar_lea.sflag (!%p196_p8), [#allocation3], %s201_s28  ;;  %s205_s11 = scalar_lea.vmem (!%p196_p8), [#allocation2], %s579_s6 }
  0x2a   : > { %768 = dma.done.wait (%p895_p7), %s202_s10, 128  }
  0x2b   : > { %770 = vsyncadd (%p895_p7), %s202_s10, 4294967168  ;;  %v804_v0 = vmov 0.0   ;;  %p235_p9 = scmp.lt.s32.totalorder %s789_s19, 1  ;;  %v938_v1 = vld [vmem:[%s205_s11] sm:$0xff]  ;;  %s805_s12 = smov 124   ;;  %vm808_vm0 = vmmov 0  }
  0x2c   : > { %597 = vmatprep.subr.mxu0 %v804_v0  ;;  %614 = vmatprep.subr.mxu1 %v804_v0  ;;  %s806_s13 = smov 122   ;;  %v255_v2 = vcombine.high %v938_v1, %v938_v1  ;;  %v247_v3 = vcombine.low %v938_v1, %v938_v1  ;;  %s809_s30 = smov 126   ;;  %v810_v4 = vmov 0   ;;  %v298_v5 = vld [vmem:[%s1048_s2 + $0x8] sm:$0xff]  ;;  %v297_v6 = vld [vmem:[%s1048_s2] sm:$0xff]  ;;  %v299_v7 = vld [vmem:[%s1048_s2 + $0x10] sm:$0xff] }
  0x2d   : > { %s1071_s19 = smov (!%p235_p9, %s789_s19), 1  ;;  %270 = vrot.lane.b32.xlu1 %v938_v1, %s805_s12  ;;  %284 = vrot.lane.b32.xlu0 %v938_v1, %s806_s13  ;;  %s811_s5 = smov 125   ;;  %vm288_vm1 = vcmask 998400   ;;  %vm290_vm2 = vcmask 1043456   ;;  %vm274_vm3 = vcmask 1014784   ;;  %vm281_vm4 = vcmask 1006592  }
  0x2e   : > { %s622_s25 = smul.u32 24, %s1071_s19  ;;  %s807_s19 = smov 123   ;;  %605 = vmatprep.mubr.msk.f32.mxu0 %vm808_vm0, %v804_v0  ;;  %608 = vmatprep.mubr.msk.f32.mxu1 %vm808_vm0, %v804_v0  ;;  %vm260_vm5 = vcmask 1031168   ;;  %vm267_vm6 = vcmask 1022976   ;;  %vm252_vm7 = vcmask 1039360   ;;  %v294_v28 = vld [vmem:[%s1047_s1] sm:$0xff] }
  0x2f   : > { %704 = vset.pattern.permute.xlu1 %v810_v4  ;;  %703 = vset.pattern.permute.xlu0 %v810_v4  ;;  %s812_s7 = smov 127   ;;  %vm315_vm8 = vcmask 228352   ;;  %v295_v29 = vld [vmem:[%s1047_s1 + $0x8] sm:$0xff]  ;;  %v296_v31 = vld [vmem:[%s1047_s1 + $0x10] sm:$0xff]  ;;  %p586_p7 = scmp.ne.s32.totalorder %s785_s18, 0 }
  0x30   : > { %s947_s15 = scalar_lea.vmem %s1049_s3, %s622_s25  ;;  %s952_s26 = scalar_lea.vmem %s1050_s4, %s622_s25 }
  0x31   : > { %279 = vrot.lane.b32.xlu1 %v938_v1, %s807_s19  ;;  %286 = vrot.lane.b32.xlu0 %v255_v2, %s806_s13 }
  0x35   : > { %272 = vrot.lane.b32.xlu1 %v255_v2, %s805_s12  ;;  %277 = vrot.lane.b32.xlu0 %v247_v3, %s807_s19 }
  0x39   : > { %258 = vrot.lane.b32.xlu1 %v255_v2, %s809_s30  ;;  %256 = vrot.lane.b32.xlu0 %v938_v1, %s809_s30 }
  0x3d   : > { %265 = vrot.lane.b32.xlu1 %v938_v1, %s811_s5  ;;  %263 = vrot.lane.b32.xlu0 %v247_v3, %s811_s5 }
  0x41   : > { %250 = vrot.lane.b32.xlu1 %v938_v1, %s812_s7  ;;  %248 = vrot.lane.b32.xlu0 %v247_v3, %s812_s7 }
  0x45   : > { %307 = vperm.xlu1 %704, %v298_v5   ;;  %302 = vperm.xlu0 %703, %v297_v6  }
  0x49   : > { %312 = vperm.xlu1 %704, %v299_v7  }
  0x9f   : > { %v271_v8 = vpop.permute.xlu1 %270  ;;  %v285_v9 = vpop.permute.xlu0 %284 }
  0xa3   : > { %v280_v10 = vpop.permute.xlu1 %279  ;;  %v287_v11 = vpop.permute.xlu0 %286 }
  0xa4   : > { %v289_v12 = vsel %vm288_vm1, %v285_v9, %v287_v11 }
  0xa5   : > { %598 = vmatpush3.msk.msra.mxu0 %vm290_vm2, %v289_v12  ;;  %618 = vmatpush3.msk.msra.mxu1 %vm290_vm2, %v289_v12 }
  0xa6   : > { %599 = vmatprep.subr.mxu0 %v804_v0  ;;  %615 = vmatprep.subr.mxu1 %v804_v0 }
  0xa7   : > { %v273_v13 = vpop.permute.xlu1 %272  ;;  %v278_v14 = vpop.permute.xlu0 %277 }
  0xa8   : > { %v275_v15 = vsel %vm274_vm3, %v271_v8, %v273_v13  ;;  %v282_v16 = vsel %vm281_vm4, %v278_v14, %v280_v10 }
  0xa9   : > { %v293_v17 = vsel %vm290_vm2, %v275_v15, %v282_v16 }
  0xaa   : > { %600 = vmatpush3.msra.mxu0 %v293_v17  ;;  %619 = vmatpush3.msra.mxu1 %v293_v17 }
  0xab   : > { %v259_v18 = vpop.permute.xlu1 %258  ;;  %v257_v19 = vpop.permute.xlu0 %256  ;;  %601 = vmatprep.subr.mxu0 %v804_v0  ;;  %616 = vmatprep.subr.mxu1 %v804_v0 }
  0xac   : > { %v261_v22 = vsel %vm260_vm5, %v257_v19, %v259_v18 }
  0xaf   : > { %v266_v20 = vpop.permute.xlu1 %265  ;;  %v264_v21 = vpop.permute.xlu0 %263 }
  0xb0   : > { %v268_v23 = vsel %vm267_vm6, %v264_v21, %v266_v20 }
  0xb1   : > { %v292_v24 = vsel %vm290_vm2, %v261_v22, %v268_v23 }
  0xb2   : > { %602 = vmatpush3.msra.mxu0 %v292_v24  ;;  %620 = vmatpush3.msra.mxu1 %v292_v24 }
  0xb3   : > { %v251_v25 = vpop.permute.xlu1 %250  ;;  %v249_v26 = vpop.permute.xlu0 %248  ;;  %603 = vmatprep.subr.mxu0 %v804_v0  ;;  %617 = vmatprep.subr.mxu1 %v804_v0 }
  0xb4   : > { %v253_v27 = vsel %vm252_vm7, %v249_v26, %v251_v25 }
  0xb5   : > { %v291_v30 = vsel %vm290_vm2, %v938_v1, %v253_v27 }
  0xb6   : > { %604 = vmatpush3.msra.mxu0 %v291_v30  ;;  %621 = vmatpush3.msra.mxu1 %v291_v30 }
  0xb7   : > { %606 = vmatmul.mubr.msk.f32.vlgmr.msra.gmra.mxu0 %vm315_vm8, %v294_v28  ;;  %609 = vmatmul.mubr.msk.f32.vlgmr.msra.gmra.mxu1 %vm315_vm8, %v295_v29 }
  0xb8   : > { %611 = vmatprep.mubr.msk.f32.mxu1 %vm808_vm0, %v804_v0 }
  0xbb   : > { %612 = vmatmul.mubr.msk.f32.gmra.mxu1 %vm315_vm8, %v296_v31 }
  0xc0   : > { %v303_v32 = vpop.permute.xlu0 %302  ;;  %v308_v33 = vpop.permute.xlu1 %307 }
  0xc4   : > { %v313_v43 = vpop.permute.xlu1 %312 }
 0x177   : > { %v393_v34 = vpop.f32.mrf.mxu0  ;;  %v398_v35 = vpop.f32.mrf.mxu1 }
 0x178   : > { %v399_v36 = vadd.f32 %v398_v35, %v308_v33  ;;  %v394_v37 = vadd.f32 %v393_v34, %v303_v32 }
 0x179   : > { %v607_v38 = vpop.f32.mrf.mxu0  ;;  %v610_v39 = vpop.f32.mrf.mxu1 }
 0x17a   : > { %407 = vadd.xlane.f32.xlu0 %v394_v37  ;;  %409 = vadd.xlane.f32.xlu1 %v399_v36  ;;  %v414_v40 = vmul.f32 %v399_v36, %v399_v36  ;;  %v413_v42 = vmul.f32 %v394_v37, %v394_v37 }
 0x17b   : > { %v403_v41 = vpop.f32.mrf.mxu1 }
 0x17c   : > { %v404_v45 = vadd.f32 %v403_v41, %v313_v43 }
 0x17d   : > { %v613_v44 = vpop.f32.mrf.mxu1 }
 0x17e   : > { %416 = vadd.xlane.f32.xlu0 %v413_v42  ;;  %418 = vadd.xlane.f32.xlu1 %v414_v40  ;;  %v415_v46 = vmul.f32 %v404_v45, %v404_v45 }
 0x182   : > { %411 = vadd.xlane.f32.xlu0 %v404_v45 }
 0x186   : > { %420 = vadd.xlane.f32.xlu0 %v415_v46 }
 0x203   : > { %v408_v47 = vpop.xlane.xlu0 %407  ;;  %v410_v48 = vpop.xlane.xlu1 %409 }
 0x207   : > { %v417_v49 = vpop.xlane.xlu0 %416  ;;  %v419_v50 = vpop.xlane.xlu1 %418 }
 0x20b   : > { %v412_v51 = vpop.xlane.xlu0 %411  ;;  %425 = sbr.rel (%p586_p7) target bundleno = 532 (0x214), region = 40 }
 0x20f   : > { %v421_v52 = vpop.xlane.xlu0 %420 }
 0x210   : > { %vm426_vm9 = vcmask 7168  }
 0x211   : > { %427 = vst.msk [vmem:[%s947_s15] sm:$0xff] %vm426_vm9, %v408_v47  ;;  %428 = vst.msk [vmem:[%s947_s15 + $0x8] sm:$0xff] %vm426_vm9, %v410_v48 }
 0x212   : > { %429 = vst.msk [vmem:[%s947_s15 + $0x10] sm:$0xff] %vm426_vm9, %v412_v51  ;;  %430 = vst.msk [vmem:[%s952_s26] sm:$0xff] %vm426_vm9, %v417_v49 }
 0x213   : > { %431 = vst.msk [vmem:[%s952_s26 + $0x8] sm:$0xff] %vm426_vm9, %v419_v50  ;;  %432 = vst.msk [vmem:[%s952_s26 + $0x10] sm:$0xff] %vm426_vm9, %v421_v52 }
 0x214 PF: > { %p587_p10 = scmp.eq.s32.totalorder %s785_s18, 0 }
 0x216   : > { %436 = sbr.rel (%p587_p10) target bundleno = 545 (0x221), region = 44 }
 0x21b   : > { %v437_v53 = vld [vmem:[%s947_s15] sm:$0xff]  ;;  %vm443_vm10 = vcmask 7168   ;;  %v438_v54 = vld [vmem:[%s947_s15 + $0x8] sm:$0xff]  ;;  %v439_v55 = vld [vmem:[%s947_s15 + $0x10] sm:$0xff] }
 0x21c   : > { %v440_v56 = vadd.f32 %v437_v53, %v408_v47  ;;  %v441_v57 = vadd.f32 %v438_v54, %v410_v48  ;;  %v442_v58 = vadd.f32 %v439_v55, %v412_v51  ;;  %v447_v59 = vld [vmem:[%s952_s26] sm:$0xff]  ;;  %v448_v60 = vld [vmem:[%s952_s26 + $0x8] sm:$0xff]  ;;  %v449_v61 = vld [vmem:[%s952_s26 + $0x10] sm:$0xff] }
 0x21d   : > { %v450_v62 = vadd.f32 %v447_v59, %v417_v49  ;;  %v451_v63 = vadd.f32 %v448_v60, %v419_v50  ;;  %v452_v0 = vadd.f32 %v449_v61, %v421_v52 }
 0x21e   : > { %444 = vst.msk [vmem:[%s947_s15] sm:$0xff] %vm443_vm10, %v440_v56  ;;  %445 = vst.msk [vmem:[%s947_s15 + $0x8] sm:$0xff] %vm443_vm10, %v441_v57 }
 0x21f   : > { %446 = vst.msk [vmem:[%s947_s15 + $0x10] sm:$0xff] %vm443_vm10, %v442_v58  ;;  %453 = vst.msk [vmem:[%s952_s26] sm:$0xff] %vm443_vm10, %v450_v62 }
 0x220   : > { %454 = vst.msk [vmem:[%s952_s26 + $0x8] sm:$0xff] %vm443_vm10, %v451_v63  ;;  %455 = vst.msk [vmem:[%s952_s26 + $0x10] sm:$0xff] %vm443_vm10, %v452_v0 }
 0x221 PF: > { %s18_s22 = sadd.s32 1, %s801_s22   ;;  %s1056_s30 = sld [smem:[#allocation5_spill]] }
 0x222   : > { %p15_p11 = scmp.ge.s32.totalorder %s18_s22, 6   ;;  %s1057_s15 = smov %s777_s16 }
 0x223   : > { %s1058_s16 = smov %s781_s17  ;;  %s1059_s17 = smov %s905_s9 }
 0x224   : > { %s1060_s18 = smov %s793_s20  ;;  %s1061_s19 = smov %s797_s21 }
 0x225   : > { %s1062_s20 = smov %s1065_s24  ;;  %17 = sbr.rel (!%p15_p11) target bundleno = 5 (0x5), region = 92 }
 0x227   : > { %s1063_s21 = smov %s1056_s30 }
 0x22a   :  { %493 = vsyncpa [#allocation3], 1 }
 0x22b   :  { %495 = vsyncpa [#allocation3 + $0x1], 1 }

</bundles_post_ra>
